<compile_context>
chip_gen: v5e
topology: v5e:2x2
jax: 0.10.0
libtpu: 0.0.40
codegen_flags: <defaults>
</compile_context>

<pallas_src>
import functools

import jax
import jax.numpy as jnp
from jax.experimental import pallas as pl
from jax.experimental.pallas import tpu as pltpu

_LANES = 128
_SUBLANES = 8
_CHUNK = _SUBLANES * _LANES        # 1024 elements = one (8,128) f32 vreg
_MAX_BLOCK_ROWS = 8192             # 8192 x 128 f32 = 4 MiB per input tile


def _round_up(x, m):
    return ((x + m - 1) // m) * m


def _reduce_tile(sq, block_rows):
    """(block_rows, 128) f32 -> (8, 128) partial using independent add chains."""
    groups = block_rows // _SUBLANES
    split = 1
    for cand in (8, 4, 2):
        if groups >= cand and groups % cand == 0:
            split = cand
            break
    if split > 1:
        # Stage 1: `split` independent accumulator chains of length groups/split.
        part = jnp.sum(sq.reshape(split, groups // split, _SUBLANES, _LANES), axis=1)
        # Stage 2: tiny chain of length `split`.
        return jnp.sum(part, axis=0)
    return jnp.sum(sq.reshape(groups, _SUBLANES, _LANES), axis=0)


def _rmse_log_kernel(x_ref, t_ref, o_ref, *, total_rows, block_rows):
    def body(mask_tail):
        x = x_ref[...].astype(jnp.float32)
        t = t_ref[...].astype(jnp.float32)
        d = jnp.log(x) - jnp.log(t)
        sq = d * d
        if mask_tail:
            # Only the (possibly partial) last block pays for the mask; OOB rows
            # (garbage VMEM) are zeroed AFTER the log via a select, so any
            # NaN/inf from log(garbage) cannot leak into the sum.
            i = pl.program_id(0)
            row = jax.lax.broadcasted_iota(jnp.int32, sq.shape, 0) + i * block_rows
            sq = jnp.where(row < total_rows, sq, jnp.float32(0.0))
        o_ref[...] = _reduce_tile(sq, block_rows)

    if total_rows % block_rows == 0:
        # No ragged block exists: single unmasked fast path everywhere.
        body(False)
    else:
        last = pl.num_programs(0) - 1

        @pl.when(pl.program_id(0) != last)
        def _():
            body(False)

        @pl.when(pl.program_id(0) == last)
        def _():
            body(True)


@jax.jit
def rmse_log(inp, target):
    """Equivalent of rmseLog().forward(input, target)."""
    assert inp.shape == target.shape

    x = inp.reshape(-1)
    t = target.reshape(-1)
    n = x.shape[0]

    n_aligned = n - (n % _CHUNK)   # static (shape-derived) Python int
    total = jnp.float32(0.0)

    if n_aligned:
        rows = n_aligned // _LANES                     # multiple of 8
        if n_aligned == n:
            xa = x.reshape(rows, _LANES)
            ta = t.reshape(rows, _LANES)
        else:
            xa = x[:n_aligned].reshape(rows, _LANES)
            ta = t[:n_aligned].reshape(rows, _LANES)

        # >= 2 blocks for non-trivial inputs (feeds both v7x TCs), capped so the
        # double-buffered working set stays well under every generation's VMEM.
        block_rows = min(_MAX_BLOCK_ROWS, _round_up(pl.cdiv(rows, 2), _SUBLANES))
        num_blocks = pl.cdiv(rows, block_rows)

        kernel = functools.partial(
            _rmse_log_kernel, total_rows=rows, block_rows=block_rows
        )
        tile_spec = pl.BlockSpec((block_rows, _LANES), lambda i: (i, 0))

        in_bytes = n_aligned * (inp.dtype.itemsize + target.dtype.itemsize)
        out_bytes = num_blocks * _SUBLANES * _LANES * 4

        partials = pl.pallas_call(
            kernel,
            out_shape=jax.ShapeDtypeStruct(
                (num_blocks * _SUBLANES, _LANES), jnp.float32
            ),
            grid_spec=pltpu.PrefetchScalarGridSpec(
                num_scalar_prefetch=0,
                grid=(num_blocks,),
                in_specs=[tile_spec, tile_spec],
                out_specs=pl.BlockSpec((_SUBLANES, _LANES), lambda i: (i, 0)),
            ),
            compiler_params=pltpu.CompilerParams(
                dimension_semantics=("parallel",),
                vmem_limit_bytes=32 * 1024 * 1024,
            ),
            cost_estimate=pl.CostEstimate(
                flops=3 * n_aligned,
                transcendentals=2 * n_aligned,
                bytes_accessed=in_bytes + out_bytes,
            ),
        )(xa, ta)

        # Tiny epilogue: cross-lane / cross-block reduce of the lane-dense
        # partial sums (also combines per-core results on v7x).
        total = total + jnp.sum(partials)

    if n_aligned != n:
        # <1024-element ragged tail in plain JAX — avoids a full jnp.pad pass
        # over both operands through HBM.
        xt = x[n_aligned:].astype(jnp.float32)
        tt = t[n_aligned:].astype(jnp.float32)
        dt = jnp.log(xt) - jnp.log(tt)
        total = total + jnp.sum(dt * dt)

    return total


def _reference(inp, target):
    d = jnp.log(inp.astype(jnp.float32)) - jnp.log(target.astype(jnp.float32))
    return jnp.sum(d * d)


if __name__ == "__main__":
    key = jax.random.PRNGKey(0)
    k1, k2 = jax.random.split(key)

    shape = (2, 4, 16, 16)  # small NCHW-like shape, positive values for log()
    inp = jax.random.uniform(k1, shape, dtype=jnp.float32, minval=0.1, maxval=2.0)
    target = jax.random.uniform(k2, shape, dtype=jnp.float32, minval=0.1, maxval=2.0)

    out = rmse_log(inp, target)
    out = jax.block_until_ready(out)

    ref = _reference(inp, target)
    assert jnp.allclose(out, ref, rtol=1e-5, atol=1e-5), (out, ref)

    print("KERNEL_OK")
</pallas_src>

<mosaic_0001>
module attributes {stable_mosaic.version = 11 : i64} {
  func.func @_rmse_log_kernel(%arg0: i32, %arg1: memref<8x128xf32, #tpu.memory_space<vmem>>, %arg2: memref<8x128xf32, #tpu.memory_space<vmem>>, %arg3: memref<8x128xf32, #tpu.memory_space<vmem>>) attributes {dimension_semantics = [#tpu.dimension_semantics<parallel>], iteration_bounds = array<i64: 2>, scalar_prefetch = 0 : i64, scratch_operands = 0 : i64, tpu.core_type = #tpu.core_type<tc>, window_params = [{transform_indices = @transform_0, window_bounds = array<i64: 8, 128>}, {transform_indices = @transform_1, window_bounds = array<i64: 8, 128>}, {transform_indices = @transform_2, window_bounds = array<i64: 8, 128>}]} {
    %c0 = arith.constant 0 : index
    %c0_0 = arith.constant 0 : index
    %0 = vector.load %arg1[%c0, %c0_0] : memref<8x128xf32, #tpu.memory_space<vmem>>, vector<8x128xf32>
    %c0_1 = arith.constant 0 : index
    %c0_2 = arith.constant 0 : index
    %1 = vector.load %arg2[%c0_1, %c0_2] : memref<8x128xf32, #tpu.memory_space<vmem>>, vector<8x128xf32>
    %2 = math.log %0 : vector<8x128xf32>
    %3 = math.log %1 : vector<8x128xf32>
    %4 = arith.subf %2, %3 : vector<8x128xf32>
    %5 = arith.mulf %4, %4 : vector<8x128xf32>
    %6 = vector.shape_cast %5 : vector<8x128xf32> to vector<1x8x128xf32>
    %cst = arith.constant dense<0.000000e+00> : vector<8x128xf32>
    %7 = vector.multi_reduction <add>, %6, %cst [0] : vector<1x8x128xf32> to vector<8x128xf32>
    %c0_3 = arith.constant 0 : index
    %c0_4 = arith.constant 0 : index
    %8 = vector.load %arg3[%c0_3, %c0_4] : memref<8x128xf32, #tpu.memory_space<vmem>>, vector<8x128xf32>
    tpu.vector_store %arg3[%c0_3, %c0_4], %7 {strides = array<i32>} : memref<8x128xf32, #tpu.memory_space<vmem>>, vector<8x128xf32>,
    return
  }
  func.func @transform_0(%arg0: i32) -> (i32, i32) {
    %c0_i32 = arith.constant 0 : i32
    %c0_i32_0 = arith.constant 0 : i32
    return %arg0, %c0_i32 : i32, i32
  }
  func.func @transform_1(%arg0: i32) -> (i32, i32) {
    %c0_i32 = arith.constant 0 : i32
    %c0_i32_0 = arith.constant 0 : i32
    return %arg0, %c0_i32 : i32, i32
  }
  func.func @transform_2(%arg0: i32) -> (i32, i32) {
    %c0_i32 = arith.constant 0 : i32
    %c0_i32_0 = arith.constant 0 : i32
    return %arg0, %c0_i32 : i32, i32
  }
}

</mosaic_0001>

<bundles_post_ra>
// kernel: rmse_log.1
= control target key start
LH: loop header
LB: loop body
LE: loop exit
PB: predicated region body
PF: predicated region fallthrough
CT: control target
= control target key end

     0   :  { %s276_s9 = smov 0   ;;  %s290_s0 = inlined_call_operand.vmem [shape: f32[16,128], index: 0, kind: input, shape index: {}]   ;;  %s291_s1 = inlined_call_operand.vmem [shape: f32[16,128], index: 1, kind: input, shape index: {}]   ;;  %s292_s2 = inlined_call_operand.vmem [shape: f32[16,128], index: 2, kind: output, shape index: {}]  }
   0x1 LB: > { %s231_s10 = sadd.s32 4294967295, %s259_s9   ;;  %p235_p0 = scmp.ge.s32.totalorder %s259_s9, 1  ;;  %s259_s9 = sphi %s276_s9, %s12_s9  }
   0x2   : > { %p120_p1 = scmp.lt.s32.totalorder %s259_s9, 3 }
   0x4   : > { %p121_p2 = pnand %p235_p0, %p120_p1 }
   0x5   : > { %p144_p3 = scmp.lt.s32.totalorder (!%p121_p2), %s231_s10, 1 }
   0x6   : > { %124 = sbr.rel (%p121_p2) target bundleno = 30 (0x1e), region = 28 }
   0xb   : > { %s294_s10 = smov (!%p144_p3, %s231_s10), 1 }
   0xc   : > { %s236_s11 = sshll.u32 %s294_s10, 3 }
   0xd   : > { %s147_s14 = scalar_lea.vmem %s290_s0, %s236_s11  ;;  %s151_s17 = scalar_lea.vmem %s291_s1, %s236_s11 }
   0xe   : > { %v156_v0 = vld [vmem:[%s147_s14] sm:$0xff]  ;;  %s155_s20 = scalar_lea.vmem %s292_s2, %s236_s11 }
   0xf   : > { %v157_v1 = vld [vmem:[%s151_s17] sm:$0xff]  ;;  %249 = vlog2.f32 %v156_v0 }
  0x10   : > { %251 = vlog2.f32 %v157_v1 }
  0x15   : > { %v250_v2 = vpop.eup %249 }
  0x16   : > { %v252_v3 = vpop.eup %251  ;;  %v159_v4 = vmul.f32 0.6931472, %v250_v2 }
  0x17   : > { %v161_v5 = vmul.f32 0.6931472, %v252_v3 }
  0x19   : > { %v162_v6 = vsub.f32 %v159_v4, %v161_v5 }
  0x1b   : > { %v163_v7 = vmul.f32 %v162_v6, %v162_v6 }
  0x1d   : > { %165 = vst [vmem:[%s155_s20] sm:$0xff] %v163_v7 }
  0x1e PF: > { %s12_s9 = sadd.s32 1, %s259_s9  }
  0x1f   : > { %p9_p4 = scmp.ge.s32.totalorder %s12_s9, 4  }
  0x21   :  { %11 = sbr.rel (!%p9_p4) target bundleno = 1 (0x1), region = 61 }

</bundles_post_ra>
